<compile_context>
chip_gen: v5e
topology: v5e:2x2
jax: 0.10.0
libtpu: 0.0.40
codegen_flags: <defaults>
</compile_context>

<pallas_src>
import functools

import jax
import jax.numpy as jnp
import numpy as np
from jax import lax
from jax.experimental import pallas as pl
from jax.experimental.pallas import tpu as pltpu


def _cross_attn_kernel(q_ref, t_ref,
                       wq_ref, bq_ref,
                       wkv_ref, bkv_ref,
                       wf_ref, bf_ref,
                       o_ref, *, B, Sq, St, tgt_dim):
    # q_ref: (B*Sq, src_dim)   t_ref: (B*St, tgt_dim)   weights already bf16.
    q_in = q_ref[...].astype(jnp.bfloat16)
    t_in = t_ref[...].astype(jnp.bfloat16)

    # Batched-over-B projections: one matmul each (M = B*Sq / B*St rows),
    # K|V fused into a single (tgt_dim, 2*tgt_dim) weight.
    q = jnp.dot(q_in, wq_ref[...], preferred_element_type=jnp.float32) + bq_ref[...]
    kv = jnp.dot(t_in, wkv_ref[...], preferred_element_type=jnp.float32) + bkv_ref[...]
    k = kv[:, :tgt_dim]
    v = kv[:, tgt_dim:]

    # Per-batch attention. Leading-dim reshapes are tile aligned (Sq, St
    # multiples of 8 at these shapes), so this is layout plumbing only.
    q3 = q.reshape(B, Sq, tgt_dim).astype(jnp.bfloat16)
    k3 = k.reshape(B, St, tgt_dim).astype(jnp.bfloat16)
    v3 = v.reshape(B, St, tgt_dim).astype(jnp.bfloat16)

    # scores = q @ k^T per batch, contracting the feature dim directly
    # (no explicit transpose / relayout of k).
    scores = lax.dot_general(q3, k3, (((2,), (2,)), ((0,), (0,))),
                             preferred_element_type=jnp.float32)        # (B, Sq, St)

    # Softmax (f32 math), max-subtracted like torch.nn.Softmax(dim=-1).
    scores = scores - jnp.max(scores, axis=-1, keepdims=True)
    p = jnp.exp(scores)
    p = p * pl.reciprocal(jnp.sum(p, axis=-1, keepdims=True), approx=True)

    # context = p @ v per batch.
    ctx = lax.dot_general(p.astype(jnp.bfloat16), v3,
                          (((2,), (1,)), ((0,), (0,))),
                          preferred_element_type=jnp.float32)           # (B, Sq, tgt_dim)

    # Final projection, again fused over the whole batch (M = B*Sq rows).
    ctx2 = ctx.reshape(B * Sq, tgt_dim).astype(jnp.bfloat16)
    out = jnp.dot(ctx2, wf_ref[...], preferred_element_type=jnp.float32) + bf_ref[...]
    o_ref[...] = out.astype(o_ref.dtype)


def cross_attention(query, target, params):
    """query: (B, Sq, src_dim); target: (B, tgt_dim, H, W) NCHW."""
    B, Sq, src_dim = query.shape
    tgt_dim = target.shape[1]
    # torch: target.view(B, -1, tgt_dim) -- raw row-major reshape (NOT a permute).
    target_r = jnp.reshape(target, (B, -1, tgt_dim))
    St = target_r.shape[1]

    wq, bq, wk, bk, wv, bv, wf, bf = params

    # Fuse the K and V projections into one wider matmul.
    wkv = jnp.concatenate([wk, wv], axis=1)          # (tgt_dim, 2*tgt_dim)
    bkv = jnp.concatenate([bk, bv], axis=0)          # (2*tgt_dim,)

    # Fold batch into the matmul M dimension.
    q_flat = query.reshape(B * Sq, src_dim)
    t_flat = target_r.reshape(B * St, tgt_dim)

    kernel = functools.partial(_cross_attn_kernel, B=B, Sq=Sq, St=St, tgt_dim=tgt_dim)
    vmem = pl.BlockSpec(memory_space=pltpu.MemorySpace.VMEM)

    out_flat = pl.pallas_call(
        kernel,
        out_shape=jax.ShapeDtypeStruct((B * Sq, src_dim), query.dtype),
        in_specs=[vmem] * 8,
        out_specs=vmem,
    )(q_flat, t_flat,
      wq.astype(jnp.bfloat16), bq.reshape(1, -1),
      wkv.astype(jnp.bfloat16), bkv.reshape(1, -1),
      wf.astype(jnp.bfloat16), bf.reshape(1, -1))

    return out_flat.reshape(B, Sq, src_dim)


def _reference(query, target, params):
    """Pure-JAX f32 reference with identical forward semantics (for validation)."""
    wq, bq, wk, bk, wv, bv, wf, bf = params
    B = target.shape[0]
    tgt_dim = target.shape[1]
    t = jnp.reshape(target, (B, -1, tgt_dim))
    q = query @ wq + bq
    k = t @ wk + bk
    v = t @ wv + bv
    scores = jnp.einsum("bqd,bkd->bqk", q, k)
    p = jax.nn.softmax(scores, axis=-1)
    ctx = jnp.einsum("bqk,bkd->bqd", p, v)
    return ctx @ wf + bf


def init_params(key, src_dim, tgt_dim):
    ks = jax.random.split(key, 8)
    # Weights stored as (in, out); torch Linear computes x @ W.T + b, so the
    # (in, out) matrix plays the role of W.T directly.
    wq = jax.random.normal(ks[0], (src_dim, tgt_dim), jnp.float32) * 0.05
    bq = jax.random.normal(ks[1], (tgt_dim,), jnp.float32) * 0.05
    wk = jax.random.normal(ks[2], (tgt_dim, tgt_dim), jnp.float32) * 0.05
    bk = jax.random.normal(ks[3], (tgt_dim,), jnp.float32) * 0.05
    wv = jax.random.normal(ks[4], (tgt_dim, tgt_dim), jnp.float32) * 0.05
    bv = jax.random.normal(ks[5], (tgt_dim,), jnp.float32) * 0.05
    wf = jax.random.normal(ks[6], (tgt_dim, src_dim), jnp.float32) * 0.05
    bf = jax.random.normal(ks[7], (src_dim,), jnp.float32) * 0.05
    return (wq, bq, wk, bk, wv, bv, wf, bf)


if __name__ == "__main__":
    B, Sq, src_dim = 2, 8, 32
    tgt_dim, H, W = 16, 4, 4

    key = jax.random.PRNGKey(0)
    kq, kt, kp = jax.random.split(key, 3)
    query = jax.random.normal(kq, (B, Sq, src_dim), jnp.float32)
    target = jax.random.normal(kt, (B, tgt_dim, H, W), jnp.float32)   # NCHW
    params = init_params(kp, src_dim, tgt_dim)

    out = cross_attention(query, target, params)
    out = jax.block_until_ready(out)

    ref = jax.block_until_ready(_reference(query, target, params))
    assert out.shape == (B, Sq, src_dim)
    # Tolerance loosened for bf16 MXU operands + approx softmax reciprocal.
    np.testing.assert_allclose(np.asarray(out), np.asarray(ref), rtol=2e-2, atol=2e-2)
    print("KERNEL_OK")
</pallas_src>

<mosaic_0001>
module attributes {stable_mosaic.version = 11 : i64} {
  func.func @_cross_attn_kernel(%arg0: memref<16x32xf32, #tpu.memory_space<vmem>>, %arg1: memref<32x16xf32, #tpu.memory_space<vmem>>, %arg2: memref<32x16xbf16, #tpu.memory_space<vmem>>, %arg3: memref<1x16xf32, #tpu.memory_space<vmem>>, %arg4: memref<16x32xbf16, #tpu.memory_space<vmem>>, %arg5: memref<1x32xf32, #tpu.memory_space<vmem>>, %arg6: memref<16x32xbf16, #tpu.memory_space<vmem>>, %arg7: memref<1x32xf32, #tpu.memory_space<vmem>>, %arg8: memref<16x32xf32, #tpu.memory_space<vmem>>) attributes {dimension_semantics = [], scalar_prefetch = 0 : i64, scratch_operands = 0 : i64, tpu.core_type = #tpu.core_type<tc>} {
    %c0 = arith.constant 0 : index
    %c0_0 = arith.constant 0 : index
    %0 = vector.load %arg0[%c0, %c0_0] : memref<16x32xf32, #tpu.memory_space<vmem>>, vector<16x32xf32>
    %1 = arith.truncf %0 : vector<16x32xf32> to vector<16x32xbf16>
    %c0_1 = arith.constant 0 : index
    %c0_2 = arith.constant 0 : index
    %2 = vector.load %arg1[%c0_1, %c0_2] : memref<32x16xf32, #tpu.memory_space<vmem>>, vector<32x16xf32>
    %3 = arith.truncf %2 : vector<32x16xf32> to vector<32x16xbf16>
    %c0_3 = arith.constant 0 : index
    %c0_4 = arith.constant 0 : index
    %4 = vector.load %arg2[%c0_3, %c0_4] : memref<32x16xbf16, #tpu.memory_space<vmem>>, vector<32x16xbf16>
    %cst = arith.constant dense<0.000000e+00> : vector<16x16xf32>
    %5 = tpu.matmul %1, %4, %cst {dimension_numbers = #tpu.dot_dimension_numbers<[1], [0], [0], [1], [0, 0, 1, 1], [], []>} : vector<16x32xbf16>, vector<32x16xbf16>, vector<16x16xf32> -> vector<16x16xf32>
    %c0_5 = arith.constant 0 : index
    %c0_6 = arith.constant 0 : index
    %6 = vector.load %arg3[%c0_5, %c0_6] : memref<1x16xf32, #tpu.memory_space<vmem>>, vector<1x16xf32>
    %7 = vector.broadcast %6 : vector<1x16xf32> to vector<16x16xf32>
    %8 = arith.addf %5, %7 : vector<16x16xf32>
    %c0_7 = arith.constant 0 : index
    %c0_8 = arith.constant 0 : index
    %9 = vector.load %arg4[%c0_7, %c0_8] : memref<16x32xbf16, #tpu.memory_space<vmem>>, vector<16x32xbf16>
    %cst_9 = arith.constant dense<0.000000e+00> : vector<32x32xf32>
    %10 = tpu.matmul %3, %9, %cst_9 {dimension_numbers = #tpu.dot_dimension_numbers<[1], [0], [0], [1], [0, 0, 1, 1], [], []>} : vector<32x16xbf16>, vector<16x32xbf16>, vector<32x32xf32> -> vector<32x32xf32>
    %c0_10 = arith.constant 0 : index
    %c0_11 = arith.constant 0 : index
    %11 = vector.load %arg5[%c0_10, %c0_11] : memref<1x32xf32, #tpu.memory_space<vmem>>, vector<1x32xf32>
    %12 = vector.broadcast %11 : vector<1x32xf32> to vector<32x32xf32>
    %13 = arith.addf %10, %12 : vector<32x32xf32>
    %14 = vector.extract_strided_slice %13 {offsets = [0, 0], sizes = [32, 16], strides = [1, 1]} : vector<32x32xf32> to vector<32x16xf32>
    %15 = vector.extract_strided_slice %13 {offsets = [0, 16], sizes = [32, 16], strides = [1, 1]} : vector<32x32xf32> to vector<32x16xf32>
    %16 = vector.shape_cast %8 : vector<16x16xf32> to vector<2x8x16xf32>
    %17 = arith.truncf %16 : vector<2x8x16xf32> to vector<2x8x16xbf16>
    %18 = vector.shape_cast %14 : vector<32x16xf32> to vector<2x16x16xf32>
    %19 = arith.truncf %18 : vector<2x16x16xf32> to vector<2x16x16xbf16>
    %20 = vector.shape_cast %15 : vector<32x16xf32> to vector<2x16x16xf32>
    %21 = arith.truncf %20 : vector<2x16x16xf32> to vector<2x16x16xbf16>
    %cst_12 = arith.constant dense<0.000000e+00> : vector<2x8x16xf32>
    %22 = tpu.matmul %17, %19, %cst_12 {dimension_numbers = #tpu.dot_dimension_numbers<[2], [2], [1], [1], [0, 0, 0, 1, 1, 1], [0], [0]>} : vector<2x8x16xbf16>, vector<2x16x16xbf16>, vector<2x8x16xf32> -> vector<2x8x16xf32>
    %cst_13 = arith.constant dense<0xFF800000> : vector<2x8xf32>
    %23 = vector.multi_reduction <maximumf>, %22, %cst_13 [2] : vector<2x8x16xf32> to vector<2x8xf32>
    %24 = vector.shape_cast %23 : vector<2x8xf32> to vector<2x8x1xf32>
    %25 = vector.broadcast %24 : vector<2x8x1xf32> to vector<2x8x16xf32>
    %26 = arith.subf %22, %25 : vector<2x8x16xf32>
    %27 = math.exp %26 : vector<2x8x16xf32>
    %cst_14 = arith.constant dense<0.000000e+00> : vector<2x8xf32>
    %28 = vector.multi_reduction <add>, %27, %cst_14 [2] : vector<2x8x16xf32> to vector<2x8xf32>
    %29 = vector.shape_cast %28 : vector<2x8xf32> to vector<2x8x1xf32>
    %30 = tpu.reciprocal %29 {approx = true} : vector<2x8x1xf32> -> vector<2x8x1xf32>
    %31 = vector.broadcast %30 : vector<2x8x1xf32> to vector<2x8x16xf32>
    %32 = arith.mulf %27, %31 : vector<2x8x16xf32>
    %33 = arith.truncf %32 : vector<2x8x16xf32> to vector<2x8x16xbf16>
    %cst_15 = arith.constant dense<0.000000e+00> : vector<2x8x16xf32>
    %34 = tpu.matmul %33, %21, %cst_15 {dimension_numbers = #tpu.dot_dimension_numbers<[2], [1], [1], [2], [0, 0, 0, 1, 1, 2], [0], [0]>} : vector<2x8x16xbf16>, vector<2x16x16xbf16>, vector<2x8x16xf32> -> vector<2x8x16xf32>
    %35 = vector.shape_cast %34 : vector<2x8x16xf32> to vector<16x16xf32>
    %36 = arith.truncf %35 : vector<16x16xf32> to vector<16x16xbf16>
    %c0_16 = arith.constant 0 : index
    %c0_17 = arith.constant 0 : index
    %37 = vector.load %arg6[%c0_16, %c0_17] : memref<16x32xbf16, #tpu.memory_space<vmem>>, vector<16x32xbf16>
    %cst_18 = arith.constant dense<0.000000e+00> : vector<16x32xf32>
    %38 = tpu.matmul %36, %37, %cst_18 {dimension_numbers = #tpu.dot_dimension_numbers<[1], [0], [0], [1], [0, 0, 1, 1], [], []>} : vector<16x16xbf16>, vector<16x32xbf16>, vector<16x32xf32> -> vector<16x32xf32>
    %c0_19 = arith.constant 0 : index
    %c0_20 = arith.constant 0 : index
    %39 = vector.load %arg7[%c0_19, %c0_20] : memref<1x32xf32, #tpu.memory_space<vmem>>, vector<1x32xf32>
    %40 = vector.broadcast %39 : vector<1x32xf32> to vector<16x32xf32>
    %41 = arith.addf %38, %40 : vector<16x32xf32>
    %c0_21 = arith.constant 0 : index
    %c0_22 = arith.constant 0 : index
    %42 = vector.load %arg8[%c0_21, %c0_22] : memref<16x32xf32, #tpu.memory_space<vmem>>, vector<16x32xf32>
    tpu.vector_store %arg8[%c0_21, %c0_22], %41 {strides = array<i32>} : memref<16x32xf32, #tpu.memory_space<vmem>>, vector<16x32xf32>,
    return
  }
}

</mosaic_0001>

<bundles_post_ra>
// kernel: tpu_custom_call.1
= control target key start
LH: loop header
LB: loop body
LE: loop exit
PB: predicated region body
PF: predicated region fallthrough
CT: control target
= control target key end

     0   :  { %vm90_vm0 = vcmask 130048   ;;  %s458_s0 = inlined_call_operand.vmem [shape: f32[16,32], index: 0, kind: input, shape index: {}]   ;;  %s459_s1 = inlined_call_operand.vmem [shape: f32[32,16], index: 1, kind: input, shape index: {}]   ;;  %s460_s2 = inlined_call_operand.vmem [shape: bf16[32,16], index: 2, kind: input, shape index: {}]   ;;  %s461_s3 = inlined_call_operand.vmem [shape: f32[1,16], index: 3, kind: input, shape index: {}]   ;;  %s462_s4 = inlined_call_operand.vmem [shape: bf16[16,32], index: 4, kind: input, shape index: {}]   ;;  %s463_s5 = inlined_call_operand.vmem [shape: f32[1,32], index: 5, kind: input, shape index: {}]   ;;  %s464_s6 = inlined_call_operand.vmem [shape: bf16[16,32], index: 6, kind: input, shape index: {}]   ;;  %s465_s7 = inlined_call_operand.vmem [shape: f32[1,32], index: 7, kind: input, shape index: {}]   ;;  %s466_s8 = inlined_call_operand.hbm [shape: f32[16,32], index: 8, kind: output, shape index: {}]  }
   0x1   :  { %v308_v0 = vld [vmem:[%s462_s4] sm:$0xff]  ;;  %v35_v2 = vld [vmem:[%s459_s1 + $0x8] sm:$0xff] }
   0x2   :  { %v34_v1 = vld [vmem:[%s459_s1] sm:$0xff]  ;;  %v307_v4 = vld [vmem:[%s460_s2 + $0x8] sm:$0xff]  ;;  %104 = vmatpush.bf16.msra.mxu1 %v308_v0 }
   0x3   :  { %v38_v3 = vpack.c.bf16 %v35_v2, %v34_v1  ;;  %v306_v5 = vld [vmem:[%s460_s2] sm:$0xff]  ;;  %70 = vmatpush.bf16.msra.mxu0 %v307_v4  ;;  %v32_v7 = vld [vmem:[%s458_s0 + $0x8] sm:$0xff] }
   0x4   :  { %v31_v6 = vld [vmem:[%s458_s0] sm:$0xff] }
   0x5   :  { %13 = vsyncpa [#allocation3], 0  ;;  %295 = vmatmul.msk.bf16.vlgmr.msra.gmra.mxu1 %vm90_vm0, %v38_v3  ;;  %v33_v8 = vpack.c.bf16 %v32_v7, %v31_v6  ;;  %vm60_vm1 = vcmask 261120   ;;  %v36_v9 = vld [vmem:[%s459_s1 + $0x10] sm:$0xff]  ;;  %v37_v10 = vld [vmem:[%s459_s1 + $0x18] sm:$0xff]  ;;  %s351_s1 = smov 112  }
   0x6   :  { %v39_v11 = vpack.c.bf16 %v37_v10, %v36_v9  ;;  %v314_v13 = vld [vmem:[%s463_s5] ss:$0 sm:$0xff]  ;;  %s352_s25 = smov [#allocation2]   ;;  %s270_s29 = sshll.u32 %s466_s8, 4  ;;  %s271_s29 = int_to_ptr.hbm [resolvable:$true] %s270_s29 }
   0x7   :  { %71 = vmatpush.bf16.msra.mxu0 %v306_v5  ;;  %v315_v21 = vld [vmem:[%s461_s3] ss:$0 sm:$0xff]  ;;  %s268_s26 = sshll.u32 %s352_s25, 4  ;;  %s353_s30 = smov 128   ;;  %s269_s26 = int_to_ptr.vmem [resolvable:$true] %s268_s26 }
   0x8   :  { %v309_v58 = vld [vmem:[%s464_s6] sm:$0xff]  ;;  %s354_s9 = smov 8  }
   0xa   :  { %290 = vmatmul.msk.bf16.vlgmr.msra.gmra.mxu0 %vm60_vm1, %v33_v8  ;;  %v316_v8 = vld [vmem:[%s465_s7] ss:$0 sm:$0xff] }
  0x15   :  { %296 = vmatmul.msk.bf16.gmra.mxu1 %vm90_vm0, %v39_v11 }
  0x82   :  { %v106_v12 = vpop.f32.mrf.mxu1 }
  0x83   :  { %v107_v14 = vadd.f32 %v314_v13, %v106_v12 }
  0x85   :  { %v118_v16 = vpack.c.bf16 %v107_v14, %v107_v14 }
  0x87   :  { %v124_v19 = vunpack.c.l.b16 %v118_v16  ;;  %v73_v22 = vpop.f32.mrf.mxu0 }
  0x88   :  { %v74_v26 = vadd.f32 %v315_v21, %v73_v22 }
  0x8a   :  { %v108_v15 = vpop.f32.mrf.mxu1  ;;  %v116_v28 = vpack.c.bf16 %v74_v26, %v74_v26 }
  0x8b   :  { %v109_v17 = vadd.f32 %v314_v13, %v108_v15 }
  0x8d   :  { %v119_v18 = vpack.c.bf16 %v109_v17, %v109_v17 }
  0x8f   :  { %v125_v20 = vunpack.c.l.b16 %v119_v18  ;;  %v75_v36 = vpop.f32.mrf.mxu0 }
  0x90   :  { %v76_v38 = vadd.f32 %v315_v21, %v75_v36 }
  0x91   :  { %v126_v23 = vpack.c.b16 %v125_v20, %v124_v19 }
  0x92   :  { %v111_v24 = vpop.f32.mrf.mxu1  ;;  %v117_v39 = vpack.c.bf16 %v76_v38, %v76_v38 }
  0x93   :  { %v131_v25 = vsel %vm90_vm0, %v126_v23, 0  ;;  %v112_v27 = vadd.f32 %v314_v13, %v111_v24 }
  0x94   :  { %140 = vmatpush.bf16.xpose.msra.mxu2 %v131_v25 }
  0x95   :  { %v120_v30 = vpack.c.bf16 %v112_v27, %v112_v27 }
  0x97   :  { %v148_v33 = vunpack.c.l.b16 %v120_v30 }
  0x9a   :  { %v113_v29 = vpop.f32.mrf.mxu1 }
  0x9b   :  { %v114_v31 = vadd.f32 %v314_v13, %v113_v29  ;;  %297 = vmatmul.msk.bf16.vlgmr.msra.gmra.mxu2 %vm90_vm0, %v116_v28 }
  0x9d   :  { %v121_v32 = vpack.c.bf16 %v114_v31, %v114_v31 }
  0x9f   :  { %v149_v34 = vunpack.c.l.b16 %v121_v32 }
  0xa1   :  { %v150_v35 = vpack.c.b16 %v149_v34, %v148_v33 }
  0xa3   :  { %213 = vrot.lane.b32.xlu2 %v150_v35, %s351_s1  ;;  %v155_v37 = vsel %vm90_vm0, %v150_v35, 0 }
  0xa4   :  { %164 = vmatpush.bf16.xpose.msra.mxu3 %v155_v37 }
  0xab   :  { %194 = vrot.lane.b32.xlu2 %v126_v23, %s351_s1  ;;  %298 = vmatmul.msk.bf16.vlgmr.msra.gmra.mxu3 %vm90_vm0, %v117_v39 }
  0xac   :  { %255 = vmatpush.bf16.msrb.mxu3 %v309_v58 }
  0xfd   :  { %v214_v40 = vpop.permute.xlu2 %213 }
  0xfe   :  { %226 = vmatpush.bf16.msrb.mxu2 %v214_v40 }
 0x105   :  { %v195_v41 = vpop.permute.xlu2 %194 }
 0x106   :  { %207 = vmatpush.bf16.msrb.mxu0 %v195_v41 }
 0x11e   :  { %v142_v42 = vpop.f32.mrf.mxu2 }
 0x11f   :  { %v170_v47 = vsel %vm90_vm0, %v142_v42, -inf }
 0x126   :  { %v144_v43 = vpop.f32.mrf.mxu2 }
 0x12e   :  { %v166_v44 = vpop.f32.mrf.mxu3 }
 0x12f   :  { %v173_v45 = vsel %vm90_vm0, %v166_v44, -inf }
 0x130   :  { %174 = vmax.xlane.f32.xlu0 %v173_v45 }
 0x136   :  { %v168_v46 = vpop.f32.mrf.mxu3 }
 0x138   :  { %171 = vmax.xlane.f32.xlu0 %v170_v47 }
 0x1a3   :  { %v175_v48 = vpop.xlane.xlu0 %174 }
 0x1a4   :  { %v177_v49 = vsub.f32 %v166_v44, %v175_v48 }
 0x1a6   :  { %v180_v50 = vmul.f32 1.442695, %v177_v49 }
 0x1a8   :  { %317 = vpow2.f32 %v180_v50 }
 0x1ab   :  { %v172_v51 = vpop.xlane.xlu0 %171 }
 0x1ac   :  { %v176_v52 = vsub.f32 %v142_v42, %v172_v51 }
 0x1ae   :  { %v318_v53 = vpop.eup %317  ;;  %v178_v54 = vmul.f32 1.442695, %v176_v52 }
 0x1af   :  { %v185_v55 = vsel %vm90_vm0, %v318_v53, 0.0 }
 0x1b0   :  { %319 = vpow2.f32 %v178_v54  ;;  %186 = vadd.xlane.f32.xlu1 %v185_v55 }
 0x1b6   :  { %v320_v56 = vpop.eup %319 }
 0x1b7   :  { %v182_v57 = vsel %vm90_vm0, %v320_v56, 0.0 }
 0x1b8   :  { %183 = vadd.xlane.f32.xlu1 %v182_v57 }
 0x223   :  { %v187_v59 = vpop.xlane.xlu1 %186 }
 0x224   :  { %321 = vrcp.f32 %v187_v59 }
 0x22a   :  { %v322_v60 = vpop.eup %321 }
 0x22b   :  { %v191_v61 = vmul.f32 %v322_v60, %v318_v53  ;;  %v184_v62 = vpop.xlane.xlu1 %183 }
 0x22c   :  { %323 = vrcp.f32 %v184_v62 }
 0x22d   :  { %v193_v63 = vpack.c.bf16 %v191_v61, %v191_v61 }
 0x22f   :  { %300 = vmatmul.msk.bf16.vlgmr.msrb.gmra.mxu2 %vm90_vm0, %v193_v63 }
 0x232   :  { %v324_v0 = vpop.eup %323 }
 0x233   :  { %v190_v1 = vmul.f32 %v324_v0, %v320_v56 }
 0x235   :  { %v192_v2 = vpack.c.bf16 %v190_v1, %v190_v1 }
 0x237   :  { %299 = vmatmul.msk.bf16.vlgmr.msrb.gmra.mxu0 %vm90_vm0, %v192_v2 }
 0x2b2   :  { %v228_v3 = vpop.f32.mrf.mxu2 }
 0x2b4   :  { %v209_v4 = vpop.f32.mrf.mxu0 }
 0x2b5   :  { %v232_v5 = vpack.c.bf16 %v228_v3, %v209_v4 }
 0x2b7   :  { %305 = vmatmul.msk.bf16.vlgmr.msrb.gmra.mxu3 %vm90_vm0, %v232_v5 }
 0x2ba   :  { %v230_v6 = vpop.f32.mrf.mxu2 }
 0x2bc   :  { %v211_v7 = vpop.f32.mrf.mxu0 }
 0x33a   :  { %v257_v9 = vpop.f32.mrf.mxu3 }
 0x33b   :  { %v258_v10 = vadd.f32 %v316_v8, %v257_v9 }
 0x33d   :  { %262 = vst.msk [vmem:[#allocation2] sm:$0xff] %vm60_vm1, %v258_v10 }
 0x342   :  { %v259_v11 = vpop.f32.mrf.mxu3 }
 0x343   :  { %v260_v12 = vadd.f32 %v316_v8, %v259_v11 }
 0x345   :  { %263 = vst.msk [vmem:[#allocation2 + $0x8] sm:$0xff] %vm60_vm1, %v260_v12 }
 0x346   :  { %276 = dma.vmem_to_hbm [thread:$0]  %s269_s26, 256, %s271_s29, [#allocation3], %s353_s30, %s353_s30, %s354_s9  }
 0x347   :  { %349 = dma.done.wait [#allocation3], 256  }
 0x348   :  { %350 = vsyncadd [#allocation3], 4294967040 }
 0x349   :  { %281 = vsyncpa [#allocation3], 1 }

</bundles_post_ra>
